<compile_context>
chip_gen: v5e
topology: v5e:2x2
jax: 0.10.0
libtpu: 0.0.40
codegen_flags: <defaults>
</compile_context>

<pallas_src>
import functools

import jax
import jax.numpy as jnp
from jax.experimental import pallas as pl
from jax.experimental.pallas import tpu as pltpu

LANE = 128        # TPU lane width (last dim)
SUBLANE = 8       # f32 sublane tile (second-to-last dim)
NEG_INF = -1e30   # finite "-inf" baked into padded vocab-lane biases


def _round_up(x, m):
    return (x + m - 1) // m * m


# --------------------------------------------------------------------------- #
# Kernel
# --------------------------------------------------------------------------- #
def command_decoder_kernel(x_ref, h_ref, c_ref,
                           w_gates_ref, b_gates_ref,
                           wl_ref, bl_ref,
                           logp_ref, h_out_ref, c_out_ref,
                           xh_scratch):
    """One decoder step: LSTMCell + Linear + LogSoftmax (all shapes padded).

      x:        (Bp, Ep)       f32   embedded tokens
      h, c:     (Bp, Up)       f32   recurrent state (HBM buffers aliased in/out)
      w_gates:  (Ep+Up, 4*Up)  bf16  [W_ih^T ; W_hh^T], gate-major columns
      b_gates:  (1, 4*Up)      f32   b_ih + b_hh (pre-summed)
      wl:       (Up, Vp)       bf16  W_logits^T
      bl:       (1, Vp)        f32   b_logits, padded lanes = -1e30
      logp:     (Bp, Vp)       f32   log-probabilities
    """
    Ep = x_ref.shape[-1]
    Up = h_ref.shape[-1]
    mxu_dtype = w_gates_ref.dtype

    h = h_ref[...]
    c = c_ref[...]

    # Stage [x, h] contiguously (concat boundary is 128-lane aligned) so the two
    # gate matmuls collapse into a single MXU pass.
    xh_scratch[:, :Ep] = x_ref[...]
    xh_scratch[:, Ep:] = h
    xh = xh_scratch[...].astype(mxu_dtype)

    gates = (jnp.dot(xh, w_gates_ref[...], preferred_element_type=jnp.float32)
             + b_gates_ref[...])                                   # (Bp, 4*Up) f32

    # Up is a multiple of 128 -> every gate slice is a full, aligned vreg block.
    i_g = jax.nn.sigmoid(gates[:, 0 * Up:1 * Up])
    f_g = jax.nn.sigmoid(gates[:, 1 * Up:2 * Up])
    g_g = jnp.tanh(gates[:, 2 * Up:3 * Up])
    o_g = jax.nn.sigmoid(gates[:, 3 * Up:4 * Up])

    c_new = f_g * c + i_g * g_g
    h_new = o_g * jnp.tanh(c_new)

    logits = (jnp.dot(h_new.astype(mxu_dtype), wl_ref[...],
                      preferred_element_type=jnp.float32)
              + bl_ref[...])                                       # (Bp, Vp) f32

    # Padded vocab lanes have bias -1e30: exp underflows to 0, so the
    # max-stabilized logsumexp over the real lanes is exact.
    m = jnp.max(logits, axis=-1, keepdims=True)
    lse = m + jnp.log(jnp.sum(jnp.exp(logits - m), axis=-1, keepdims=True))

    logp_ref[...] = logits - lse
    h_out_ref[...] = h_new
    c_out_ref[...] = c_new


# --------------------------------------------------------------------------- #
# One-time parameter preparation (hoisted out of the per-step path)
# --------------------------------------------------------------------------- #
def prepare_params(params, units, vocab_size, embed_dim, mxu_dtype=jnp.bfloat16):
    E, U, V = embed_dim, units, vocab_size
    Ep, Up, Vp = _round_up(E, LANE), _round_up(U, LANE), _round_up(V, LANE)

    w_ih, w_hh = params["w_ih"], params["w_hh"]            # (4U, E), (4U, U)
    b_sum = params["b_ih"] + params["b_hh"]                # (4U,)
    w_l, b_l = params["w_logits"], params["b_logits"]      # (V, U), (V,)

    # Fused, gate-major, padded [W_ih^T ; W_hh^T] -> (Ep+Up, 4*Up)
    w_gates = jnp.zeros((Ep + Up, 4 * Up), jnp.float32)
    b_gates = jnp.zeros((1, 4 * Up), jnp.float32)
    for g in range(4):  # PyTorch LSTMCell gate order: i, f, g, o
        w_gates = w_gates.at[:E, g * Up:g * Up + U].set(w_ih[g * U:(g + 1) * U, :].T)
        w_gates = w_gates.at[Ep:Ep + U, g * Up:g * Up + U].set(w_hh[g * U:(g + 1) * U, :].T)
        b_gates = b_gates.at[0, g * Up:g * Up + U].set(b_sum[g * U:(g + 1) * U])

    wl_t = jnp.zeros((Up, Vp), jnp.float32).at[:U, :V].set(w_l.T)
    bl = jnp.full((1, Vp), NEG_INF, jnp.float32).at[0, :V].set(b_l)

    embed = jnp.zeros((params["embed"].shape[0], Ep), jnp.float32)
    embed = embed.at[:, :E].set(params["embed"])

    return {
        "embed": embed,                       # (vocab, Ep) f32
        "w_gates": w_gates.astype(mxu_dtype),  # (Ep+Up, 4*Up)
        "b_gates": b_gates,                    # (1, 4*Up) f32
        "wl_t": wl_t.astype(mxu_dtype),        # (Up, Vp)
        "bl": bl,                              # (1, Vp) f32
    }


def init_hidden(batch_size, units):
    """Zero LSTM state, already padded (sublane-full batch, lane-full hidden)."""
    Bp = _round_up(batch_size, SUBLANE)
    Up = _round_up(units, LANE)
    return (jnp.zeros((Bp, Up), jnp.float32), jnp.zeros((Bp, Up), jnp.float32))


# --------------------------------------------------------------------------- #
# Forward wrapper (one decoder step)
# --------------------------------------------------------------------------- #
@functools.partial(jax.jit, static_argnames=("units", "vocab_size"))
def command_decoder_forward(tokens, state, prepped, *, units, vocab_size):
    h, c = state                          # padded (Bp, Up)
    B = tokens.shape[0]
    Bp, Up = h.shape
    Ep = prepped["embed"].shape[1]
    Vp = prepped["bl"].shape[1]

    # Embedding gather stays as JAX glue (see TODO(synk) for in-kernel gather).
    tok_pad = jnp.pad(tokens, (0, Bp - B))
    x = prepped["embed"][tok_pad]         # (Bp, Ep) f32

    mxu_dtype = prepped["w_gates"].dtype
    bpe = 2 if mxu_dtype == jnp.bfloat16 else 4
    flops = 2 * Bp * (Ep + Up) * 4 * Up + 2 * Bp * Up * Vp + 10 * Bp * Up
    transcendentals = Bp * (5 * Up + Vp + 1)
    bytes_accessed = (4 * Bp * (Ep + 2 * Up)                     # x, h, c in
                      + bpe * ((Ep + Up) * 4 * Up + Up * Vp)     # weights in
                      + 4 * (4 * Up + Vp)                        # biases in
                      + 4 * Bp * (Vp + 2 * Up))                  # outputs

    vmem = pl.BlockSpec(memory_space=pltpu.MemorySpace.VMEM)
    logp_pad, h_new, c_new = pl.pallas_call(
        command_decoder_kernel,
        out_shape=(
            jax.ShapeDtypeStruct((Bp, Vp), jnp.float32),
            jax.ShapeDtypeStruct((Bp, Up), jnp.float32),
            jax.ShapeDtypeStruct((Bp, Up), jnp.float32),
        ),
        in_specs=[vmem] * 7,
        out_specs=(vmem, vmem, vmem),
        scratch_shapes=[pltpu.VMEM((Bp, Ep + Up), jnp.float32)],
        input_output_aliases={1: 1, 2: 2},   # reuse h/c HBM buffers for new state
        compiler_params=pltpu.CompilerParams(vmem_limit_bytes=32 * 1024 * 1024),
        cost_estimate=pl.CostEstimate(flops=flops,
                                      transcendentals=transcendentals,
                                      bytes_accessed=bytes_accessed),
    )(x, h, c, prepped["w_gates"], prepped["b_gates"],
      prepped["wl_t"], prepped["bl"])

    logp = logp_pad[:B, :vocab_size]       # strip batch/vocab padding
    return logp, (h_new, c_new)            # state stays padded (feed back as-is)


# --------------------------------------------------------------------------- #
# Init + pure-JAX reference (for correctness check)
# --------------------------------------------------------------------------- #
def init_params(key, units, vocab_size, embed_dim):
    """Deterministic init mirroring CommandDecoder.reset_parameters."""
    k_embed, k_ih, k_hh, k_logits = jax.random.split(key, 4)

    def xavier_uniform(k, shape):  # shape = (fan_out, fan_in)
        fan_out, fan_in = shape
        bound = (6.0 / (fan_in + fan_out)) ** 0.5
        return jax.random.uniform(k, shape, jnp.float32, -bound, bound)

    def orthogonal(k, shape):
        a = jax.random.normal(k, shape, jnp.float32)
        q, r = jnp.linalg.qr(a)
        q = q * jnp.sign(jnp.diagonal(r))[None, :]
        return q

    return {
        "embed": jax.random.uniform(k_embed, (vocab_size, embed_dim),
                                    jnp.float32, -0.05, 0.05),
        "w_ih": xavier_uniform(k_ih, (4 * units, embed_dim)),
        "w_hh": orthogonal(k_hh, (4 * units, units)),
        "b_ih": jnp.zeros((4 * units,), jnp.float32),
        "b_hh": jnp.zeros((4 * units,), jnp.float32),
        "w_logits": xavier_uniform(k_logits, (vocab_size, units)),
        "b_logits": jnp.zeros((vocab_size,), jnp.float32),  # bias_vector=None
    }


def reference_forward(tokens, h0, c0, params):
    x = params["embed"][tokens]
    gates = (x @ params["w_ih"].T + params["b_ih"]
             + h0 @ params["w_hh"].T + params["b_hh"])
    U = h0.shape[-1]
    i_g = jax.nn.sigmoid(gates[:, :U])
    f_g = jax.nn.sigmoid(gates[:, U:2 * U])
    g_g = jnp.tanh(gates[:, 2 * U:3 * U])
    o_g = jax.nn.sigmoid(gates[:, 3 * U:])
    c_new = f_g * c0 + i_g * g_g
    h_new = o_g * jnp.tanh(c_new)
    logits = h_new @ params["w_logits"].T + params["b_logits"]
    return jax.nn.log_softmax(logits, axis=1), (h_new, c_new)


if __name__ == "__main__":
    units, vocab_size, embed_dim, batch = 32, 16, 32, 2

    key = jax.random.PRNGKey(0)
    k_params, k_tok = jax.random.split(key)
    params = init_params(k_params, units, vocab_size, embed_dim)

    # One-time prep: fuse / transpose / pad / bf16-cast the weights.
    prepped = prepare_params(params, units, vocab_size, embed_dim,
                             mxu_dtype=jnp.bfloat16)

    tokens = jax.random.randint(k_tok, (batch,), 0, vocab_size, dtype=jnp.int32)
    state = init_hidden(batch, units)     # padded zero state

    logp, (h1, c1) = command_decoder_forward(tokens, state, prepped,
                                             units=units, vocab_size=vocab_size)
    jax.block_until_ready((logp, h1, c1))

    # Correctness vs pure-f32 reference (bf16 MXU inputs -> loose tolerance).
    logp_ref, (h_ref, c_ref) = reference_forward(
        tokens, jnp.zeros((batch, units), jnp.float32),
        jnp.zeros((batch, units), jnp.float32), params)

    assert logp.shape == (batch, vocab_size)
    assert jnp.allclose(logp, logp_ref, atol=2e-2), float(jnp.max(jnp.abs(logp - logp_ref)))
    assert jnp.allclose(h1[:batch, :units], h_ref, atol=2e-2)
    assert jnp.allclose(c1[:batch, :units], c_ref, atol=2e-2)
    # Padded hidden lanes must remain exactly zero so the recurrence is closed.
    assert jnp.all(h1[:, units:] == 0.0) and jnp.all(c1[:, units:] == 0.0)

    print("KERNEL_OK")
</pallas_src>

<mosaic_0001>
module attributes {stable_mosaic.version = 11 : i64} {
  func.func @command_decoder_kernel(%arg0: memref<8x128xf32, #tpu.memory_space<vmem>>, %arg1: memref<8x128xf32, #tpu.memory_space<vmem>>, %arg2: memref<8x128xf32, #tpu.memory_space<vmem>>, %arg3: memref<256x512xbf16, #tpu.memory_space<vmem>>, %arg4: memref<1x512xf32, #tpu.memory_space<vmem>>, %arg5: memref<128x128xbf16, #tpu.memory_space<vmem>>, %arg6: memref<1x128xf32, #tpu.memory_space<vmem>>, %arg7: memref<8x128xf32, #tpu.memory_space<vmem>>, %arg8: memref<8x128xf32, #tpu.memory_space<vmem>>, %arg9: memref<8x128xf32, #tpu.memory_space<vmem>>, %arg10: memref<8x256xf32, #tpu.memory_space<vmem>>) attributes {dimension_semantics = [], scalar_prefetch = 0 : i64, scratch_operands = 1 : i64, tpu.core_type = #tpu.core_type<tc>} {
    %c0 = arith.constant 0 : index
    %c0_0 = arith.constant 0 : index
    %0 = vector.load %arg1[%c0, %c0_0] : memref<8x128xf32, #tpu.memory_space<vmem>>, vector<8x128xf32>
    %c0_1 = arith.constant 0 : index
    %c0_2 = arith.constant 0 : index
    %1 = vector.load %arg2[%c0_1, %c0_2] : memref<8x128xf32, #tpu.memory_space<vmem>>, vector<8x128xf32>
    %c0_3 = arith.constant 0 : index
    %c0_4 = arith.constant 0 : index
    %2 = vector.load %arg0[%c0_3, %c0_4] : memref<8x128xf32, #tpu.memory_space<vmem>>, vector<8x128xf32>
    %c0_5 = arith.constant 0 : index
    %c0_6 = arith.constant 0 : index
    %3 = vector.load %arg10[%c0_5, %c0_6] : memref<8x256xf32, #tpu.memory_space<vmem>>, vector<8x128xf32>
    tpu.vector_store %arg10[%c0_5, %c0_6], %2 {strides = array<i32>} : memref<8x256xf32, #tpu.memory_space<vmem>>, vector<8x128xf32>,
    %c0_7 = arith.constant 0 : index
    %c128 = arith.constant 128 : index
    %4 = vector.load %arg10[%c0_7, %c128] : memref<8x256xf32, #tpu.memory_space<vmem>>, vector<8x128xf32>
    tpu.vector_store %arg10[%c0_7, %c128], %0 {strides = array<i32>} : memref<8x256xf32, #tpu.memory_space<vmem>>, vector<8x128xf32>,
    %c0_8 = arith.constant 0 : index
    %c0_9 = arith.constant 0 : index
    %5 = vector.load %arg10[%c0_8, %c0_9] : memref<8x256xf32, #tpu.memory_space<vmem>>, vector<8x256xf32>
    %6 = arith.truncf %5 : vector<8x256xf32> to vector<8x256xbf16>
    %c0_10 = arith.constant 0 : index
    %c0_11 = arith.constant 0 : index
    %7 = vector.load %arg3[%c0_10, %c0_11] : memref<256x512xbf16, #tpu.memory_space<vmem>>, vector<256x512xbf16>
    %cst = arith.constant dense<0.000000e+00> : vector<8x512xf32>
    %8 = tpu.matmul %6, %7, %cst {dimension_numbers = #tpu.dot_dimension_numbers<[1], [0], [0], [1], [0, 0, 1, 1], [], []>} : vector<8x256xbf16>, vector<256x512xbf16>, vector<8x512xf32> -> vector<8x512xf32>
    %c0_12 = arith.constant 0 : index
    %c0_13 = arith.constant 0 : index
    %9 = vector.load %arg4[%c0_12, %c0_13] : memref<1x512xf32, #tpu.memory_space<vmem>>, vector<1x512xf32>
    %10 = vector.broadcast %9 : vector<1x512xf32> to vector<8x512xf32>
    %11 = arith.addf %8, %10 : vector<8x512xf32>
    %12 = vector.extract_strided_slice %11 {offsets = [0, 0], sizes = [8, 128], strides = [1, 1]} : vector<8x512xf32> to vector<8x128xf32>
    %13 = arith.negf %12 : vector<8x128xf32>
    %14 = math.exp %13 : vector<8x128xf32>
    %cst_14 = arith.constant 1.000000e+00 : f32
    %15 = vector.broadcast %cst_14 : f32 to vector<8x128xf32>
    %16 = arith.addf %15, %14 : vector<8x128xf32>
    %17 = arith.divf %15, %16 : vector<8x128xf32>
    %18 = vector.extract_strided_slice %11 {offsets = [0, 128], sizes = [8, 128], strides = [1, 1]} : vector<8x512xf32> to vector<8x128xf32>
    %19 = arith.negf %18 : vector<8x128xf32>
    %20 = math.exp %19 : vector<8x128xf32>
    %cst_15 = arith.constant 1.000000e+00 : f32
    %21 = vector.broadcast %cst_15 : f32 to vector<8x128xf32>
    %22 = arith.addf %21, %20 : vector<8x128xf32>
    %23 = arith.divf %21, %22 : vector<8x128xf32>
    %24 = vector.extract_strided_slice %11 {offsets = [0, 256], sizes = [8, 128], strides = [1, 1]} : vector<8x512xf32> to vector<8x128xf32>
    %25 = math.tanh %24 : vector<8x128xf32>
    %26 = vector.extract_strided_slice %11 {offsets = [0, 384], sizes = [8, 128], strides = [1, 1]} : vector<8x512xf32> to vector<8x128xf32>
    %27 = arith.negf %26 : vector<8x128xf32>
    %28 = math.exp %27 : vector<8x128xf32>
    %cst_16 = arith.constant 1.000000e+00 : f32
    %29 = vector.broadcast %cst_16 : f32 to vector<8x128xf32>
    %30 = arith.addf %29, %28 : vector<8x128xf32>
    %31 = arith.divf %29, %30 : vector<8x128xf32>
    %32 = arith.mulf %23, %1 : vector<8x128xf32>
    %33 = arith.mulf %17, %25 : vector<8x128xf32>
    %34 = arith.addf %32, %33 : vector<8x128xf32>
    %35 = math.tanh %34 : vector<8x128xf32>
    %36 = arith.mulf %31, %35 : vector<8x128xf32>
    %37 = arith.truncf %36 : vector<8x128xf32> to vector<8x128xbf16>
    %c0_17 = arith.constant 0 : index
    %c0_18 = arith.constant 0 : index
    %38 = vector.load %arg5[%c0_17, %c0_18] : memref<128x128xbf16, #tpu.memory_space<vmem>>, vector<128x128xbf16>
    %cst_19 = arith.constant dense<0.000000e+00> : vector<8x128xf32>
    %39 = tpu.matmul %37, %38, %cst_19 {dimension_numbers = #tpu.dot_dimension_numbers<[1], [0], [0], [1], [0, 0, 1, 1], [], []>} : vector<8x128xbf16>, vector<128x128xbf16>, vector<8x128xf32> -> vector<8x128xf32>
    %c0_20 = arith.constant 0 : index
    %c0_21 = arith.constant 0 : index
    %40 = vector.load %arg6[%c0_20, %c0_21] : memref<1x128xf32, #tpu.memory_space<vmem>>, vector<1x128xf32>
    %41 = vector.broadcast %40 : vector<1x128xf32> to vector<8x128xf32>
    %42 = arith.addf %39, %41 : vector<8x128xf32>
    %cst_22 = arith.constant dense<0xFF800000> : vector<8xf32>
    %43 = vector.multi_reduction <maximumf>, %42, %cst_22 [1] : vector<8x128xf32> to vector<8xf32>
    %44 = vector.shape_cast %43 : vector<8xf32> to vector<8x1xf32>
    %45 = vector.broadcast %44 : vector<8x1xf32> to vector<8x128xf32>
    %46 = arith.subf %42, %45 : vector<8x128xf32>
    %47 = math.exp %46 : vector<8x128xf32>
    %cst_23 = arith.constant dense<0.000000e+00> : vector<8xf32>
    %48 = vector.multi_reduction <add>, %47, %cst_23 [1] : vector<8x128xf32> to vector<8xf32>
    %49 = vector.shape_cast %48 : vector<8xf32> to vector<8x1xf32>
    %50 = math.log %49 : vector<8x1xf32>
    %51 = arith.addf %44, %50 : vector<8x1xf32>
    %52 = vector.broadcast %51 : vector<8x1xf32> to vector<8x128xf32>
    %53 = arith.subf %42, %52 : vector<8x128xf32>
    %c0_24 = arith.constant 0 : index
    %c0_25 = arith.constant 0 : index
    %54 = vector.load %arg7[%c0_24, %c0_25] : memref<8x128xf32, #tpu.memory_space<vmem>>, vector<8x128xf32>
    tpu.vector_store %arg7[%c0_24, %c0_25], %53 {strides = array<i32>} : memref<8x128xf32, #tpu.memory_space<vmem>>, vector<8x128xf32>,
    %c0_26 = arith.constant 0 : index
    %c0_27 = arith.constant 0 : index
    %55 = vector.load %arg8[%c0_26, %c0_27] : memref<8x128xf32, #tpu.memory_space<vmem>>, vector<8x128xf32>
    tpu.vector_store %arg8[%c0_26, %c0_27], %36 {strides = array<i32>} : memref<8x128xf32, #tpu.memory_space<vmem>>, vector<8x128xf32>,
    %c0_28 = arith.constant 0 : index
    %c0_29 = arith.constant 0 : index
    %56 = vector.load %arg9[%c0_28, %c0_29] : memref<8x128xf32, #tpu.memory_space<vmem>>, vector<8x128xf32>
    tpu.vector_store %arg9[%c0_28, %c0_29], %34 {strides = array<i32>} : memref<8x128xf32, #tpu.memory_space<vmem>>, vector<8x128xf32>,
    return
  }
}

</mosaic_0001>

<bundles_post_ra>
// kernel: command_decoder_forward.1
= control target key start
LH: loop header
LB: loop body
LE: loop exit
PB: predicated region body
PF: predicated region fallthrough
CT: control target
= control target key end

     0   :  { %15 = vsyncpa [#allocation4], 0  ;;  %s1137_s12 = smov [#allocation3]   ;;  %s1138_s14 = smov 256   ;;  %s1273_s0 = inlined_call_operand.vmem [shape: f32[8,128], index: 0, kind: input, shape index: {}]   ;;  %s1274_s1 = inlined_call_operand.vmem [shape: f32[8,128], index: 1, kind: input, shape index: {}, may-alias: {1,8}]   ;;  %s1275_s2 = inlined_call_operand.vmem [shape: f32[8,128], index: 2, kind: input, shape index: {}, may-alias: {2,9}]   ;;  %s1276_s3 = inlined_call_operand.hbm [shape: bf16[256,512], index: 3, kind: input, shape index: {}]   ;;  %s1277_s4 = inlined_call_operand.vmem [shape: f32[1,512], index: 4, kind: input, shape index: {}]   ;;  %s1278_s5 = inlined_call_operand.vmem [shape: bf16[128,128], index: 5, kind: input, shape index: {}]   ;;  %s1279_s6 = inlined_call_operand.vmem [shape: f32[1,128], index: 6, kind: input, shape index: {}]   ;;  %s1280_s7 = inlined_call_operand.vmem [shape: f32[8,128], index: 7, kind: output, shape index: {0}]   ;;  %s1281_s8 = inlined_call_operand.vmem [shape: f32[8,128], index: 8, kind: output, shape index: {1}, may-alias: {1,8}]   ;;  %s1282_s9 = inlined_call_operand.vmem [shape: f32[8,128], index: 9, kind: output, shape index: {2}, may-alias: {2,9}]  }
   0x1   :  { %s26_s11 = sshll.u32 %s1276_s3, 4  ;;  %s28_s13 = sshll.u32 %s1137_s12, 4  ;;  %s27_s11 = int_to_ptr.hbm [resolvable:$true] %s26_s11  ;;  %s29_s13 = int_to_ptr.vmem [resolvable:$true] %s28_s13 }
   0x2   :  { %s1139_s15 = smov 16  }
   0x3   :  { %34 = dma.hbm_to_vmem [thread:$0]  %s27_s11, 8192, %s29_s13, [#allocation4], %s1138_s14, %s1138_s14, %s1139_s15  }
   0x4   :  { %1135 = dma.done.wait [#allocation4], 8192  }
   0x5   :  { %1136 = vsyncadd [#allocation4], 4294959104  ;;  %v838_v0 = vld [vmem:[#allocation3 + $0xe0] sm:$0xf]  ;;  %v1045_v1 = vld [vmem:[#allocation3 + $0xec] sm:$0xf0] }
   0x6   :  { %v1043_v2 = vld [vmem:[#allocation3 + $0xe4] sm:$0xf]  ;;  %v839_v3 = vor.u32 %v1045_v1, %v838_v0  ;;  %v840_v4 = vld [vmem:[#allocation3 + $0xf0] sm:$0xf0]  ;;  %v966_v9 = vld [vmem:[#allocation3 + $0x1e0] sm:$0xf] }
   0x7   :  { %v1075_v5 = vld [vmem:[#allocation3 + $0x1e4] sm:$0xf]  ;;  %v968_v6 = vld [vmem:[#allocation3 + $0x1f0] sm:$0xf0]  ;;  %v843_v7 = vor.u32 %v1043_v2, %v840_v4  ;;  %v1077_v10 = vld [vmem:[#allocation3 + $0x1ec] sm:$0xf0] }
   0x8   :  { %v971_v8 = vor.u32 %v1075_v5, %v968_v6  ;;  %v822_v11 = vld [vmem:[#allocation3 + $0xc0] sm:$0xf]  ;;  %448 = vmatpush.bf16.msra.mxu0 %v839_v3  ;;  %v967_v12 = vor.u32 %v1077_v10, %v966_v9  ;;  %v1041_v13 = vld [vmem:[#allocation3 + $0xcc] sm:$0xf0]  ;;  %v1039_v14 = vld [vmem:[#allocation3 + $0xc4] sm:$0xf] }
   0x9   :  { %v824_v15 = vld [vmem:[#allocation3 + $0xd0] sm:$0xf0]  ;;  %474 = vmatpush.bf16.msra.mxu2 %v843_v7  ;;  %v823_v16 = vor.u32 %v1041_v13, %v822_v11  ;;  %v1071_v18 = vld [vmem:[#allocation3 + $0x1c4] sm:$0xf]  ;;  %v950_v20 = vld [vmem:[#allocation3 + $0x1c0] sm:$0xf] }
   0xa   :  { %487 = vmatpush.bf16.msra.mxu3 %v971_v8  ;;  %v827_v17 = vor.u32 %v1039_v14, %v824_v15  ;;  %v952_v19 = vld [vmem:[#allocation3 + $0x1d0] sm:$0xf0]  ;;  %461 = vmatpush.bf16.msra.mxu1 %v967_v12  ;;  %v1073_v22 = vld [vmem:[#allocation3 + $0x1cc] sm:$0xf0]  ;;  %v806_v23 = vld [vmem:[#allocation3 + $0xa0] sm:$0xf] }
   0xb   :  { %v955_v21 = vor.u32 %v1071_v18, %v952_v19  ;;  %v1037_v24 = vld [vmem:[#allocation3 + $0xac] sm:$0xf0]  ;;  %v951_v25 = vor.u32 %v1073_v22, %v950_v20  ;;  %v1035_v26 = vld [vmem:[#allocation3 + $0xa4] sm:$0xf]  ;;  %v808_v27 = vld [vmem:[#allocation3 + $0xb0] sm:$0xf0] }
   0xc   :  { %v1067_v28 = vld [vmem:[#allocation3 + $0x1a4] sm:$0xf]  ;;  %449 = vmatpush.bf16.msra.mxu0 %v823_v16  ;;  %v807_v29 = vor.u32 %v1037_v24, %v806_v23  ;;  %v936_v30 = vld [vmem:[#allocation3 + $0x1b0] sm:$0xf0]  ;;  %v934_v31 = vld [vmem:[#allocation3 + $0x1a0] sm:$0xf]  ;;  %v811_v33 = vor.u32 %v1035_v26, %v808_v27 }
   0xd   :  { %v1069_v32 = vld [vmem:[#allocation3 + $0x1ac] sm:$0xf0]  ;;  %475 = vmatpush.bf16.msra.mxu2 %v827_v17  ;;  %v939_v34 = vor.u32 %v1067_v28, %v936_v30  ;;  %v790_v35 = vld [vmem:[#allocation3 + $0x80] sm:$0xf]  ;;  %v1031_v37 = vld [vmem:[#allocation3 + $0x84] sm:$0xf] }
   0xe   :  { %488 = vmatpush.bf16.msra.mxu3 %v955_v21  ;;  %v1033_v36 = vld [vmem:[#allocation3 + $0x8c] sm:$0xf0]  ;;  %462 = vmatpush.bf16.msra.mxu1 %v951_v25  ;;  %v935_v38 = vor.u32 %v1069_v32, %v934_v31  ;;  %v792_v39 = vld [vmem:[#allocation3 + $0x90] sm:$0xf0]  ;;  %v1063_v40 = vld [vmem:[#allocation3 + $0x184] sm:$0xf] }
   0xf   :  { %v920_v41 = vld [vmem:[#allocation3 + $0x190] sm:$0xf0]  ;;  %v918_v42 = vld [vmem:[#allocation3 + $0x180] sm:$0xf]  ;;  %v1065_v43 = vld [vmem:[#allocation3 + $0x18c] sm:$0xf0]  ;;  %v791_v44 = vor.u32 %v1033_v36, %v790_v35  ;;  %v795_v45 = vor.u32 %v1031_v37, %v792_v39 }
  0x10   :  { %450 = vmatpush.bf16.msra.mxu0 %v807_v29  ;;  %v923_v46 = vor.u32 %v1063_v40, %v920_v41  ;;  %v774_v47 = vld [vmem:[#allocation3 + $0x60] sm:$0xf]  ;;  %v1029_v48 = vld [vmem:[#allocation3 + $0x6c] sm:$0xf0]  ;;  %v1027_v49 = vld [vmem:[#allocation3 + $0x64] sm:$0xf]  ;;  %v919_v50 = vor.u32 %v1065_v43, %v918_v42 }
  0x11   :  { %476 = vmatpush.bf16.msra.mxu2 %v811_v33  ;;  %v776_v51 = vld [vmem:[#allocation3 + $0x70] sm:$0xf0]  ;;  %v1059_v52 = vld [vmem:[#allocation3 + $0x164] sm:$0xf]  ;;  %v902_v54 = vld [vmem:[#allocation3 + $0x160] sm:$0xf]  ;;  %v775_v56 = vor.u32 %v1029_v48, %v774_v47 }
  0x12   :  { %489 = vmatpush.bf16.msra.mxu3 %v939_v34  ;;  %463 = vmatpush.bf16.msra.mxu1 %v935_v38  ;;  %v904_v53 = vld [vmem:[#allocation3 + $0x170] sm:$0xf0]  ;;  %v1061_v55 = vld [vmem:[#allocation3 + $0x16c] sm:$0xf0]  ;;  %v779_v57 = vor.u32 %v1027_v49, %v776_v51  ;;  %v758_v59 = vld [vmem:[#allocation3 + $0x40] sm:$0xf] }
  0x13   :  { %v907_v58 = vor.u32 %v1059_v52, %v904_v53  ;;  %v1025_v60 = vld [vmem:[#allocation3 + $0x4c] sm:$0xf0]  ;;  %v1023_v61 = vld [vmem:[#allocation3 + $0x44] sm:$0xf]  ;;  %v903_v62 = vor.u32 %v1061_v55, %v902_v54  ;;  %v760_v63 = vld [vmem:[#allocation3 + $0x50] sm:$0xf0] }
  0x14   :  { %451 = vmatpush.bf16.msra.mxu0 %v791_v44  ;;  %v1055_v0 = vld [vmem:[#allocation3 + $0x144] sm:$0xf]  ;;  %v888_v1 = vld [vmem:[#allocation3 + $0x150] sm:$0xf0]  ;;  %v886_v2 = vld [vmem:[#allocation3 + $0x140] sm:$0xf]  ;;  %v759_v4 = vor.u32 %v1025_v60, %v758_v59  ;;  %v763_v5 = vor.u32 %v1023_v61, %v760_v63 }
  0x15   :  { %477 = vmatpush.bf16.msra.mxu2 %v795_v45  ;;  %v1057_v3 = vld [vmem:[#allocation3 + $0x14c] sm:$0xf0]  ;;  %v891_v6 = vor.u32 %v1055_v0, %v888_v1  ;;  %v742_v7 = vld [vmem:[#allocation3 + $0x20] sm:$0xf]  ;;  %v1019_v9 = vld [vmem:[#allocation3 + $0x24] sm:$0xf] }
  0x16   :  { %490 = vmatpush.bf16.msra.mxu3 %v923_v46  ;;  %464 = vmatpush.bf16.msra.mxu1 %v919_v50  ;;  %v1021_v8 = vld [vmem:[#allocation3 + $0x2c] sm:$0xf0]  ;;  %v887_v10 = vor.u32 %v1057_v3, %v886_v2  ;;  %v744_v11 = vld [vmem:[#allocation3 + $0x30] sm:$0xf0]  ;;  %v1051_v12 = vld [vmem:[#allocation3 + $0x124] sm:$0xf] }
  0x17   :  { %v872_v13 = vld [vmem:[#allocation3 + $0x130] sm:$0xf0]  ;;  %v870_v14 = vld [vmem:[#allocation3 + $0x120] sm:$0xf]  ;;  %v1053_v15 = vld [vmem:[#allocation3 + $0x12c] sm:$0xf0]  ;;  %v743_v16 = vor.u32 %v1021_v8, %v742_v7  ;;  %v747_v19 = vor.u32 %v1019_v9, %v744_v11 }
  0x18   :  { %452 = vmatpush.bf16.msra.mxu0 %v775_v56  ;;  %v726_v17 = vld [vmem:[#allocation3] sm:$0xf]  ;;  %v1017_v18 = vld [vmem:[#allocation3 + $0xc] sm:$0xf0]  ;;  %v875_v20 = vor.u32 %v1051_v12, %v872_v13  ;;  %v1015_v21 = vld [vmem:[#allocation3 + $0x4] sm:$0xf]  ;;  %v871_v24 = vor.u32 %v1053_v15, %v870_v14 }
  0x19   :  { %478 = vmatpush.bf16.msra.mxu2 %v779_v57  ;;  %v728_v22 = vld [vmem:[#allocation3 + $0x10] sm:$0xf0]  ;;  %v1047_v23 = vld [vmem:[#allocation3 + $0x104] sm:$0xf]  ;;  %v846_v26 = vld [vmem:[#allocation3 + $0xe8] sm:$0xf]  ;;  %v727_v31 = vor.u32 %v1017_v18, %v726_v17 }
  0x1a   :  { %491 = vmatpush.bf16.msra.mxu3 %v907_v58  ;;  %465 = vmatpush.bf16.msra.mxu1 %v903_v62  ;;  %v856_v25 = vld [vmem:[#allocation3 + $0x110] sm:$0xf0]  ;;  %v1046_v27 = vld [vmem:[#allocation3 + $0xf4] sm:$0xf0]  ;;  %v1044_v28 = vld [vmem:[#allocation3 + $0xec] sm:$0xf]  ;;  %v731_v35 = vor.u32 %v1015_v21, %v728_v22 }
  0x1b   :  { %v848_v29 = vld [vmem:[#allocation3 + $0xf8] sm:$0xf0]  ;;  %v1076_v30 = vld [vmem:[#allocation3 + $0x1ec] sm:$0xf]  ;;  %v854_v33 = vld [vmem:[#allocation3 + $0x100] sm:$0xf]  ;;  %v859_v36 = vor.u32 %v1047_v23, %v856_v25  ;;  %v847_v40 = vor.u32 %v1046_v27, %v846_v26 }
  0x1c   :  { %453 = vmatpush.bf16.msra.mxu0 %v759_v4  ;;  %v976_v32 = vld [vmem:[#allocation3 + $0x1f8] sm:$0xf0]  ;;  %v1049_v34 = vld [vmem:[#allocation3 + $0x10c] sm:$0xf0]  ;;  %v47_v37 = vld [vmem:[%s1273_s0] sm:$0xff]  ;;  %v851_v41 = vor.u32 %v1044_v28, %v848_v29 }
  0x1d   :  { %479 = vmatpush.bf16.msra.mxu2 %v763_v5  ;;  %v974_v38 = vld [vmem:[#allocation3 + $0x1e8] sm:$0xf]  ;;  %v1078_v39 = vld [vmem:[#allocation3 + $0x1f4] sm:$0xf0]  ;;  %v45_v42 = vld [vmem:[%s1274_s1] sm:$0xff]  ;;  %v979_v44 = vor.u32 %v1076_v30, %v976_v32  ;;  %v855_v45 = vor.u32 %v1049_v34, %v854_v33  ;;  %v1199_v49 = vpack.c.bf16 %v47_v37, %v47_v37 }
  0x1e   :  { %492 = vmatpush.bf16.msra.mxu3 %v891_v6  ;;  %466 = vmatpush.bf16.msra.mxu1 %v887_v10  ;;  %v830_v43 = vld [vmem:[#allocation3 + $0xc8] sm:$0xf]  ;;  %v1042_v46 = vld [vmem:[#allocation3 + $0xd4] sm:$0xf0]  ;;  %v1040_v47 = vld [vmem:[#allocation3 + $0xcc] sm:$0xf]  ;;  %v975_v50 = vor.u32 %v1078_v39, %v974_v38  ;;  %v1201_v53 = vpack.c.bf16 %v45_v42, %v45_v42 }
  0x1f   :  { %v832_v48 = vld [vmem:[#allocation3 + $0xd8] sm:$0xf0]  ;;  %v1072_v51 = vld [vmem:[#allocation3 + $0x1cc] sm:$0xf]  ;;  %v958_v54 = vld [vmem:[#allocation3 + $0x1c8] sm:$0xf]  ;;  %v831_v56 = vor.u32 %v1042_v46, %v830_v43 }
  0x20   :  { %454 = vmatpush.bf16.msra.mxu0 %v743_v16  ;;  %v960_v52 = vld [vmem:[#allocation3 + $0x1d8] sm:$0xf0]  ;;  %v1074_v55 = vld [vmem:[#allocation3 + $0x1d4] sm:$0xf0]  ;;  %v835_v57 = vor.u32 %v1040_v47, %v832_v48  ;;  %v814_v58 = vld [vmem:[#allocation3 + $0xa8] sm:$0xf] }
  0x21   :  { %480 = vmatpush.bf16.msra.mxu2 %v747_v19  ;;  %v963_v59 = vor.u32 %v1072_v51, %v960_v52  ;;  %v1038_v60 = vld [vmem:[#allocation3 + $0xb4] sm:$0xf0]  ;;  %v1036_v61 = vld [vmem:[#allocation3 + $0xac] sm:$0xf]  ;;  %v816_v62 = vld [vmem:[#allocation3 + $0xb8] sm:$0xf0]  ;;  %v959_v63 = vor.u32 %v1074_v55, %v958_v54 }
  0x22   :  { %493 = vmatpush.bf16.msra.mxu3 %v875_v20  ;;  %467 = vmatpush.bf16.msra.mxu1 %v871_v24  ;;  %v1068_v0 = vld [vmem:[#allocation3 + $0x1ac] sm:$0xf]  ;;  %v944_v1 = vld [vmem:[#allocation3 + $0x1b8] sm:$0xf0]  ;;  %v942_v2 = vld [vmem:[#allocation3 + $0x1a8] sm:$0xf]  ;;  %v815_v4 = vor.u32 %v1038_v60, %v814_v58  ;;  %v819_v5 = vor.u32 %v1036_v61, %v816_v62 }
  0x23   :  { %v1070_v3 = vld [vmem:[#allocation3 + $0x1b4] sm:$0xf0]  ;;  %v798_v6 = vld [vmem:[#allocation3 + $0x88] sm:$0xf]  ;;  %v947_v7 = vor.u32 %v1068_v0, %v944_v1  ;;  %v1032_v9 = vld [vmem:[#allocation3 + $0x8c] sm:$0xf] }
  0x24   :  { %455 = vmatpush.bf16.msra.mxu0 %v727_v31  ;;  %v1034_v8 = vld [vmem:[#allocation3 + $0x94] sm:$0xf0]  ;;  %v800_v10 = vld [vmem:[#allocation3 + $0x98] sm:$0xf0]  ;;  %v943_v11 = vor.u32 %v1070_v3, %v942_v2  ;;  %v1064_v12 = vld [vmem:[#allocation3 + $0x18c] sm:$0xf] }
  0x25   :  { %481 = vmatpush.bf16.msra.mxu2 %v731_v35  ;;  %v928_v13 = vld [vmem:[#allocation3 + $0x198] sm:$0xf0]  ;;  %v926_v14 = vld [vmem:[#allocation3 + $0x188] sm:$0xf]  ;;  %v1066_v15 = vld [vmem:[#allocation3 + $0x194] sm:$0xf0]  ;;  %v799_v16 = vor.u32 %v1034_v8, %v798_v6  ;;  %v803_v17 = vor.u32 %v1032_v9, %v800_v10 }
  0x26   :  { %494 = vmatpush.bf16.msra.mxu3 %v859_v36  ;;  %468 = vmatpush.bf16.msra.mxu1 %v855_v45  ;;  %v782_v18 = vld [vmem:[#allocation3 + $0x68] sm:$0xf]  ;;  %v931_v19 = vor.u32 %v1064_v12, %v928_v13  ;;  %v1030_v20 = vld [vmem:[#allocation3 + $0x74] sm:$0xf0]  ;;  %v1028_v21 = vld [vmem:[#allocation3 + $0x6c] sm:$0xf]  ;;  %v927_v23 = vor.u32 %v1066_v15, %v926_v14 }
  0x27   :  { %456 = vmatmul.bf16.vlgmr.msra.gmra.mxu0 %v1199_v49  ;;  %v784_v22 = vld [vmem:[#allocation3 + $0x78] sm:$0xf0]  ;;  %v1060_v24 = vld [vmem:[#allocation3 + $0x16c] sm:$0xf]  ;;  %v910_v26 = vld [vmem:[#allocation3 + $0x168] sm:$0xf]  ;;  %v783_v28 = vor.u32 %v1030_v20, %v782_v18 }
  0x28   :  { %500 = vmatpush.bf16.msrb.mxu0 %v847_v40  ;;  %482 = vmatmul.bf16.vlgmr.msra.gmra.mxu2 %v1199_v49  ;;  %v912_v25 = vld [vmem:[#allocation3 + $0x178] sm:$0xf0]  ;;  %v1062_v27 = vld [vmem:[#allocation3 + $0x174] sm:$0xf0]  ;;  %v787_v29 = vor.u32 %v1028_v21, %v784_v22  ;;  %v766_v30 = vld [vmem:[#allocation3 + $0x48] sm:$0xf] }
  0x29   :  { %526 = vmatpush.bf16.msrb.mxu2 %v851_v41  ;;  %495 = vmatmul.bf16.vlgmr.msra.gmra.mxu3 %v1201_v53  ;;  %v915_v31 = vor.u32 %v1060_v24, %v912_v25  ;;  %v1026_v32 = vld [vmem:[#allocation3 + $0x54] sm:$0xf0]  ;;  %v1024_v33 = vld [vmem:[#allocation3 + $0x4c] sm:$0xf]  ;;  %v768_v34 = vld [vmem:[#allocation3 + $0x58] sm:$0xf0]  ;;  %v911_v35 = vor.u32 %v1062_v27, %v910_v26 }
  0x2a   :  { %539 = vmatpush.bf16.msrb.mxu3 %v979_v44  ;;  %513 = vmatpush.bf16.msrb.mxu1 %v975_v50  ;;  %v1056_v36 = vld [vmem:[#allocation3 + $0x14c] sm:$0xf]  ;;  %v896_v37 = vld [vmem:[#allocation3 + $0x158] sm:$0xf0]  ;;  %v894_v38 = vld [vmem:[#allocation3 + $0x148] sm:$0xf]  ;;  %v767_v40 = vor.u32 %v1026_v32, %v766_v30  ;;  %v771_v41 = vor.u32 %v1024_v33, %v768_v34 }
  0x2b   :  { %469 = vmatmul.bf16.vlgmr.msra.gmra.mxu1 %v1201_v53  ;;  %v1058_v39 = vld [vmem:[#allocation3 + $0x154] sm:$0xf0]  ;;  %v750_v42 = vld [vmem:[#allocation3 + $0x28] sm:$0xf]  ;;  %v899_v43 = vor.u32 %v1056_v36, %v896_v37  ;;  %v1020_v45 = vld [vmem:[#allocation3 + $0x2c] sm:$0xf] }
  0x2c   :  { %501 = vmatpush.bf16.msrb.mxu0 %v831_v56  ;;  %v1022_v44 = vld [vmem:[#allocation3 + $0x34] sm:$0xf0]  ;;  %v752_v46 = vld [vmem:[#allocation3 + $0x38] sm:$0xf0]  ;;  %v895_v47 = vor.u32 %v1058_v39, %v894_v38  ;;  %v1052_v48 = vld [vmem:[#allocation3 + $0x12c] sm:$0xf] }
  0x2d   :  { %527 = vmatpush.bf16.msrb.mxu2 %v835_v57  ;;  %v880_v50 = vld [vmem:[#allocation3 + $0x138] sm:$0xf0]  ;;  %v878_v51 = vld [vmem:[#allocation3 + $0x128] sm:$0xf]  ;;  %v1054_v52 = vld [vmem:[#allocation3 + $0x134] sm:$0xf0]  ;;  %v751_v54 = vor.u32 %v1022_v44, %v750_v42  ;;  %v755_v55 = vor.u32 %v1020_v45, %v752_v46 }
  0x2e   :  { %540 = vmatpush.bf16.msrb.mxu3 %v963_v59  ;;  %514 = vmatpush.bf16.msrb.mxu1 %v959_v63  ;;  %v734_v56 = vld [vmem:[#allocation3 + $0x8] sm:$0xf]  ;;  %v883_v57 = vor.u32 %v1052_v48, %v880_v50  ;;  %v1018_v58 = vld [vmem:[#allocation3 + $0x14] sm:$0xf0]  ;;  %v1016_v59 = vld [vmem:[#allocation3 + $0xc] sm:$0xf]  ;;  %v879_v61 = vor.u32 %v1054_v52, %v878_v51 }
  0x2f   :  { %v736_v60 = vld [vmem:[#allocation3 + $0x18] sm:$0xf0]  ;;  %v1048_v62 = vld [vmem:[#allocation3 + $0x10c] sm:$0xf]  ;;  %v862_v0 = vld [vmem:[#allocation3 + $0x108] sm:$0xf]  ;;  %v735_v2 = vor.u32 %v1018_v58, %v734_v56 }
  0x30   :  { %502 = vmatpush.bf16.msrb.mxu0 %v815_v4  ;;  %v864_v63 = vld [vmem:[#allocation3 + $0x118] sm:$0xf0]  ;;  %v1050_v1 = vld [vmem:[#allocation3 + $0x114] sm:$0xf0]  ;;  %v739_v3 = vor.u32 %v1016_v59, %v736_v60  ;;  %v1214_v6 = vld [vmem:[%s1277_s4] sm:$0xf] }
  0x31   :  { %528 = vmatpush.bf16.msrb.mxu2 %v819_v5  ;;  %v867_v4 = vor.u32 %v1048_v62, %v864_v63  ;;  %v863_v5 = vor.u32 %v1050_v1, %v862_v0  ;;  %v121_v10 = vperm.slane %v1214_v6, 1  ;;  %v1085_v20 = vld [vmem:[%s1278_s5 + $0x30] sm:$0xff]  ;;  %v1084_v25 = vld [vmem:[%s1278_s5 + $0x28] sm:$0xff]  ;;  %v122_v33 = vperm.slane %v1214_v6, 2  ;;  %v46_v1 = vld [vmem:[%s1275_s2] sm:$0xff] }
  0x32   :  { %541 = vmatpush.bf16.msrb.mxu3 %v947_v7  ;;  %515 = vmatpush.bf16.msrb.mxu1 %v943_v11  ;;  %v120_v7 = vperm.slane %v1214_v6, 0  ;;  %v1081_v36 = vld [vmem:[%s1278_s5 + $0x10] sm:$0xff]  ;;  %v123_v51 = vperm.slane %v1214_v6, 3 }
  0x34   :  { %503 = vmatpush.bf16.msrb.mxu0 %v799_v16 }
  0x35   :  { %529 = vmatpush.bf16.msrb.mxu2 %v803_v17 }
  0x36   :  { %542 = vmatpush.bf16.msrb.mxu3 %v931_v19  ;;  %516 = vmatpush.bf16.msrb.mxu1 %v927_v23 }
  0x38   :  { %504 = vmatpush.bf16.msrb.mxu0 %v783_v28  ;;  %v1083_v28 = vld [vmem:[%s1278_s5 + $0x20] sm:$0xff] }
  0x39   :  { %530 = vmatpush.bf16.msrb.mxu2 %v787_v29 }
  0x3a   :  { %543 = vmatpush.bf16.msrb.mxu3 %v915_v31  ;;  %517 = vmatpush.bf16.msrb.mxu1 %v911_v35  ;;  %v1082_v31 = vld [vmem:[%s1278_s5 + $0x18] sm:$0xff] }
  0x3c   :  { %505 = vmatpush.bf16.msrb.mxu0 %v767_v40 }
  0x3d   :  { %531 = vmatpush.bf16.msrb.mxu2 %v771_v41 }
  0x3e   :  { %544 = vmatpush.bf16.msrb.mxu3 %v899_v43  ;;  %518 = vmatpush.bf16.msrb.mxu1 %v895_v47  ;;  %v1080_v43 = vld [vmem:[%s1278_s5 + $0x8] sm:$0xff] }
  0x40   :  { %506 = vmatpush.bf16.msrb.mxu0 %v751_v54 }
  0x41   :  { %532 = vmatpush.bf16.msrb.mxu2 %v755_v55 }
  0x42   :  { %545 = vmatpush.bf16.msrb.mxu3 %v883_v57  ;;  %519 = vmatpush.bf16.msrb.mxu1 %v879_v61  ;;  %v1079_v57 = vld [vmem:[%s1278_s5] sm:$0xff] }
  0x44   :  { %507 = vmatpush.bf16.msrb.mxu0 %v735_v2 }
  0x45   :  { %533 = vmatpush.bf16.msrb.mxu2 %v739_v3 }
  0x46   :  { %546 = vmatpush.bf16.msrb.mxu3 %v867_v4  ;;  %520 = vmatpush.bf16.msrb.mxu1 %v863_v5 }
  0x47   :  { %508 = vmatmul.bf16.vlgmr.msrb.gmra.mxu0 %v1199_v49 }
  0x48   :  { %534 = vmatmul.bf16.vlgmr.msrb.gmra.mxu2 %v1199_v49 }
  0x49   :  { %547 = vmatmul.bf16.vlgmr.msrb.gmra.mxu3 %v1201_v53  ;;  %521 = vmatmul.bf16.vlgmr.msrb.gmra.mxu1 %v1201_v53  ;;  %v1086_v53 = vld [vmem:[%s1278_s5 + $0x38] sm:$0xff] }
  0x4a   :  { %684 = vmatpush.bf16.msra.mxu0 %v1086_v53 }
  0x4e   :  { %685 = vmatpush.bf16.msra.mxu0 %v1085_v20 }
  0x52   :  { %686 = vmatpush.bf16.msra.mxu0 %v1084_v25 }
  0x56   :  { %687 = vmatpush.bf16.msra.mxu0 %v1083_v28 }
  0x5a   :  { %688 = vmatpush.bf16.msra.mxu0 %v1082_v31 }
  0x5e   :  { %689 = vmatpush.bf16.msra.mxu0 %v1081_v36 }
  0x62   :  { %690 = vmatpush.bf16.msra.mxu0 %v1080_v43 }
  0x66   :  { %691 = vmatpush.bf16.msra.mxu0 %v1079_v57 }
  0xa4   :  { %v457_v8 = vpop.f32.mrf.mxu0 }
  0xa5   :  { %v458_v9 = vadd.f32 %v457_v8, %v120_v7 }
  0xa8   :  { %v470_v11 = vpop.f32.mrf.mxu1 }
  0xa9   :  { %v471_v12 = vadd.f32 %v470_v11, %v458_v9 }
  0xab   :  { %v483_v13 = vpop.f32.mrf.mxu2  ;;  %v980_v14 = vmul.f32 -1.442695, %v471_v12 }
  0xac   :  { %v484_v49 = vadd.f32 %v483_v13, %v121_v10  ;;  %v496_v15 = vpop.f32.mrf.mxu3  ;;  %v459_v17 = vpop.f32.mrf.mxu0 }
  0xad   :  { %1091 = vpow2.f32 %v980_v14 }
  0xae   :  { %v497_v16 = vadd.f32 %v496_v15, %v484_v49 }
  0xb0   :  { %v981_v18 = vmul.f32 -1.442695, %v497_v16  ;;  %v472_v19 = vpop.f32.mrf.mxu1 }
  0xb2   :  { %1093 = vpow2.f32 %v981_v18 }
  0xb3   :  { %v1092_v21 = vpop.eup %1091  ;;  %v485_v22 = vpop.f32.mrf.mxu2 }
  0xb4   :  { %v555_v23 = vadd.f32 1.0, %v1092_v21  ;;  %v498_v24 = vpop.f32.mrf.mxu3 }
  0xb6   :  { %1095 = vrcp.f32 %v555_v23  ;;  %vm561_vm0 = vweird.f32 %v555_v23  ;;  %v565_v39 = vand.u32 2147483647, %v555_v23  ;;  %v567_v42 = vand.u32 2147483648, %v555_v23 }
  0xb8   :  { %v1094_v26 = vpop.eup %1093  ;;  %v568_v56 = vor.u32 1.1754944e-38, %v567_v42  ;;  %vm566_vm6 = vcmp.eq.f32.partialorder %v565_v39, 8.507059e+37 }
  0xb9   :  { %v574_v27 = vadd.f32 1.0, %v1094_v26  ;;  %v1090_v26 = vld [vmem:[%s1279_s6] ss:$0 sm:$0xff] }
  0xbb   :  { %1097 = vrcp.f32 %v574_v27  ;;  %vm580_vm2 = vweird.f32 %v574_v27  ;;  %v586_v40 = vand.u32 2147483648, %v574_v27  ;;  %v584_v47 = vand.u32 2147483647, %v574_v27 }
  0xbc   :  { %v1096_v29 = vpop.eup %1095 }
  0xbd   :  { %v557_v30 = vmul.f32 %v1096_v29, %v555_v23  ;;  %vm562_vm1 = vweird.f32 %v1096_v29  ;;  %v587_v55 = vor.u32 1.1754944e-38, %v586_v40  ;;  %vm585_vm7 = vcmp.eq.f32.partialorder %v584_v47, 8.507059e+37 }
  0xbe   :  { %vm1241_vm4 = vmor %vm561_vm0, %vm562_vm1 }
  0xbf   :  { %v558_v32 = vsub.f32 1.0, %v557_v30 }
  0xc1   :  { %v1098_v34 = vpop.eup %1097  ;;  %v559_v35 = vmul.f32 %v1096_v29, %v558_v32 }
  0xc2   :  { %v576_v37 = vmul.f32 %v1098_v34, %v574_v27  ;;  %vm581_vm3 = vweird.f32 %v1098_v34 }
  0xc3   :  { %v560_v46 = vadd.f32 %v1096_v29, %v559_v35  ;;  %vm1247_vm5 = vmor %vm580_vm2, %vm581_vm3 }
  0xc4   :  { %v509_v38 = vpop.f32.mrf.mxu0  ;;  %v577_v44 = vsub.f32 1.0, %v576_v37 }
  0xc5   :  { %v510_v41 = vadd.f32 %v509_v38, %v122_v33  ;;  %v564_v58 = vsel %vm1241_vm4, %v1096_v29, %v560_v46 }
  0xc6   :  { %v522_v45 = vpop.f32.mrf.mxu1  ;;  %v578_v52 = vmul.f32 %v1098_v34, %v577_v44  ;;  %v569_v2 = vsel %vm566_vm6, %v568_v56, %v564_v58 }
  0xc7   :  { %v523_v48 = vadd.f32 %v522_v45, %v510_v41 }
  0xc8   :  { %v579_v59 = vadd.f32 %v1098_v34, %v578_v52 }
  0xc9   :  { %1099 = vtanh.f32 %v523_v48 }
  0xca   :  { %v583_v63 = vsel %vm1247_vm5, %v1098_v34, %v579_v59 }
  0xcb   :  { %v535_v60 = vpop.f32.mrf.mxu2  ;;  %v588_v3 = vsel %vm585_vm7, %v587_v55, %v583_v63 }
  0xcc   :  { %v536_v61 = vadd.f32 %v535_v60, %v123_v51  ;;  %v548_v62 = vpop.f32.mrf.mxu3  ;;  %v511_v0 = vpop.f32.mrf.mxu0  ;;  %v610_v8 = vmul.f32 %v588_v3, %v46_v1 }
  0xce   :  { %v549_v4 = vadd.f32 %v548_v62, %v536_v61  ;;  %v524_v5 = vpop.f32.mrf.mxu1 }
  0xcf   :  { %v1100_v6 = vpop.eup %1099 }
  0xd0   :  { %v982_v7 = vmul.f32 -1.442695, %v549_v4  ;;  %v611_v9 = vmul.f32 %v1100_v6, %v569_v2 }
  0xd2   :  { %1101 = vpow2.f32 %v982_v7  ;;  %v612_v10 = vadd.f32 %v611_v9, %v610_v8 }
  0xd3   :  { %v537_v11 = vpop.f32.mrf.mxu2 }
  0xd4   :  { %v550_v12 = vpop.f32.mrf.mxu3  ;;  %710 = vst [vmem:[%s1282_s9] sm:$0xff] %v612_v10 }
  0xd8   :  { %v1102_v13 = vpop.eup %1101 }
  0xd9   :  { %v594_v14 = vadd.f32 1.0, %v1102_v13 }
  0xdb   :  { %1103 = vrcp.f32 %v594_v14  ;;  %v606_v16 = vand.u32 2147483648, %v594_v14  ;;  %v604_v18 = vand.u32 2147483647, %v594_v14  ;;  %vm600_vm9 = vweird.f32 %v594_v14 }
  0xdc   :  { %1105 = vtanh.f32 %v612_v10 }
  0xdd   :  { %v607_v20 = vor.u32 1.1754944e-38, %v606_v16  ;;  %vm605_vm11 = vcmp.eq.f32.partialorder %v604_v18, 8.507059e+37 }
  0xe1   :  { %v1104_v49 = vpop.eup %1103 }
  0xe2   :  { %v596_v15 = vmul.f32 %v1104_v49, %v594_v14  ;;  %vm601_vm8 = vweird.f32 %v1104_v49  ;;  %v1106_v22 = vpop.eup %1105 }
  0xe3   :  { %vm602_vm10 = vmor %vm600_vm9, %vm601_vm8 }
  0xe4   :  { %v597_v53 = vsub.f32 1.0, %v596_v15 }
  0xe6   :  { %v598_v17 = vmul.f32 %v1104_v49, %v597_v53 }
  0xe8   :  { %v599_v19 = vadd.f32 %v1104_v49, %v598_v17 }
  0xea   :  { %v603_v21 = vsel %vm602_vm10, %v1104_v49, %v599_v19 }
  0xeb   :  { %v608_v23 = vsel %vm605_vm11, %v607_v20, %v603_v21 }
  0xec   :  { %v614_v24 = vmul.f32 %v1106_v22, %v608_v23 }
  0xee   :  { %v615_v25 = vpack.c.bf16 %v614_v24, %v614_v24  ;;  %709 = vst [vmem:[%s1281_s8] sm:$0xff] %v614_v24 }
  0xf0   :  { %692 = vmatmul.bf16.vlgmr.msra.gmra.mxu0 %v615_v25 }
 0x16d   :  { %v693_v27 = vpop.f32.mrf.mxu0 }
 0x16e   :  { %v694_v28 = vadd.f32 %v1090_v26, %v693_v27 }
 0x170   :  { %697 = vmax.xlane.f32.xlu0 %v694_v28 }
 0x175   :  { %v695_v29 = vpop.f32.mrf.mxu0 }
 0x1e3   :  { %v698_v30 = vpop.xlane.xlu0 %697 }
 0x1e4   :  { %v699_v31 = vsub.f32 %v694_v28, %v698_v30 }
 0x1e6   :  { %v700_v32 = vmul.f32 1.442695, %v699_v31 }
 0x1e8   :  { %1107 = vpow2.f32 %v700_v32 }
 0x1ee   :  { %v1108_v33 = vpop.eup %1107 }
 0x1ef   :  { %702 = vadd.xlane.f32.xlu0 %v1108_v33 }
 0x262   :  { %v703_v34 = vpop.xlane.xlu0 %702 }
 0x263   :  { %1109 = vlog2.f32 %v703_v34 }
 0x269   :  { %v1110_v35 = vpop.eup %1109 }
 0x26a   :  { %v705_v36 = vmul.f32 0.6931472, %v1110_v35 }
 0x26c   :  { %v706_v37 = vadd.f32 %v705_v36, %v698_v30 }
 0x26e   :  { %v707_v38 = vsub.f32 %v694_v28, %v706_v37 }
 0x270   :  { %708 = vst [vmem:[%s1280_s7] sm:$0xff] %v707_v38 }
 0x271   :  { %723 = vsyncpa [#allocation4], 1 }

</bundles_post_ra>
